<compile_context>
chip_gen: v7x
topology: tpu7x:2x2x1
jax: 0.10.0
libtpu: 0.0.40
codegen_flags: <defaults>
</compile_context>

<pallas_src>
import functools

import jax
import jax.numpy as jnp
from jax import lax
from jax.experimental import pallas as pl
from jax.experimental.pallas import tpu as pltpu


def _actor_kernel(x_ref, w1_ref, b1_ref, w2_ref, b2_ref, w3_ref, b3_ref,
                  out_ref, *, max_action):
    """x_ref : (TILE_B, state_size) f32   batch-tiled state
    wN_ref: (out_feat, in_feat)   f32   VMEM-resident across grid steps
    bN_ref: (1, out_feat)         f32   VMEM-resident
    out   : (TILE_B, action_size) f32   module layout, stored directly
    """
    # Contract the last dims of both operands: h = x @ W^T (rhs-transposed MXU matmul).
    dimnums = (((1,), (1,)), ((), ()))

    x = x_ref[...].astype(jnp.bfloat16)

    # fc1 + ReLU  (bf16 MXU operands, f32 accumulation; elementwise stays f32)
    h = lax.dot_general(x, w1_ref[...].astype(jnp.bfloat16), dimnums,
                        preferred_element_type=jnp.float32)
    h = jnp.maximum(h + b1_ref[...], 0.0)

    # fc2 + ReLU
    h = lax.dot_general(h.astype(jnp.bfloat16), w2_ref[...].astype(jnp.bfloat16),
                        dimnums, preferred_element_type=jnp.float32)
    h = jnp.maximum(h + b2_ref[...], 0.0)

    # mu head + tanh + max_action scale
    mu = lax.dot_general(h.astype(jnp.bfloat16), w3_ref[...].astype(jnp.bfloat16),
                         dimnums, preferred_element_type=jnp.float32)
    out_ref[...] = (max_action * jnp.tanh(mu + b3_ref[...])).astype(out_ref.dtype)


def actor_forward(state, params, max_action, *, tile_b=2048):
    """state: (B, state_size) f32. Returns (B, action_size) f32 (module semantics).

    params: weights stored (out_features, in_features) f32, biases (1, out_features) f32.
    """
    w1, b1, w2, b2, w3, b3 = params
    B, state_size = state.shape
    fc1 = w1.shape[0]
    fc2 = w2.shape[0]
    action_size = w3.shape[0]

    # Batch tiling: multiple of 128 (lane/sublane aligned), large enough to amortize the
    # ~0.35us per-grid-step overhead, and capped so there are >= 2 grid steps whenever the
    # batch allows it (lets v7x shard the "parallel" axis across its 2 TensorCores).
    pad_b = pl.cdiv(B, 128) * 128
    tile_b = max(128, pl.cdiv(int(tile_b), 128) * 128)
    tile_b = min(tile_b, pad_b)
    if pad_b >= 256:
        tile_b = min(tile_b, max(128, (pad_b // 2) // 128 * 128))
    grid = (pl.cdiv(B, tile_b),)

    def resident(a):
        # Whole-array block, constant index_map -> DMA'd once, VMEM-resident.
        return pl.BlockSpec(a.shape, lambda i: (0, 0))

    flops = 2 * B * (state_size * fc1 + fc1 * fc2 + fc2 * action_size)
    bytes_accessed = (
        4 * B * state_size                                            # f32 state in
        + 4 * (fc1 * state_size + fc2 * fc1 + action_size * fc2)      # f32 weights
        + 4 * (fc1 + fc2 + action_size)                               # f32 biases
        + 4 * B * action_size)                                        # f32 output

    # TODO(synk): max_action is baked in at trace time (it is a construction constant in
    # the PyTorch module); pass it as an SMEM scalar if it must vary at runtime.
    kernel = functools.partial(_actor_kernel, max_action=float(max_action))
    return pl.pallas_call(
        kernel,
        out_shape=jax.ShapeDtypeStruct((B, action_size), jnp.float32),
        grid=grid,
        in_specs=[
            pl.BlockSpec((tile_b, state_size), lambda i: (i, 0)),     # batch-tiled state
            resident(w1), resident(b1),
            resident(w2), resident(b2),
            resident(w3), resident(b3),
        ],
        out_specs=pl.BlockSpec((tile_b, action_size), lambda i: (i, 0)),
        compiler_params=pltpu.CompilerParams(
            dimension_semantics=("parallel",)),                       # v7x megacore
        cost_estimate=pl.CostEstimate(flops=flops,
                                      transcendentals=B * action_size,
                                      bytes_accessed=bytes_accessed),
    )(state, w1, b1, w2, b2, w3, b3)


def init_actor_params(key, state_size, action_size, fc1=32, fc2=32):
    """PyTorch-style uniform(+-1/sqrt(fan_in)) init.
    Weights stored as (out_features, in_features); biases as (1, out_features)."""
    ks = jax.random.split(key, 6)

    def linear(kw, kb, fan_in, fan_out):
        bound = 1.0 / (fan_in ** 0.5)
        w = jax.random.uniform(kw, (fan_out, fan_in), jnp.float32, -bound, bound)
        b = jax.random.uniform(kb, (1, fan_out), jnp.float32, -bound, bound)
        return w, b

    w1, b1 = linear(ks[0], ks[1], state_size, fc1)
    w2, b2 = linear(ks[2], ks[3], fc1, fc2)
    w3, b3 = linear(ks[4], ks[5], fc2, action_size)
    return (w1, b1, w2, b2, w3, b3)


if __name__ == "__main__":
    key = jax.random.PRNGKey(0)
    k_params, k_state = jax.random.split(key)

    batch = 8
    state_size = 16
    action_size = 8
    max_action = 2.0

    params = init_actor_params(k_params, state_size, action_size, fc1=32, fc2=32)
    state = jax.random.normal(k_state, (batch, state_size), jnp.float32)

    out = actor_forward(state, params, max_action)
    out = jax.block_until_ready(out)
    assert out.shape == (batch, action_size)

    w1, b1, w2, b2, w3, b3 = params

    # Reference 1: identical math (bf16 operands, f32 accumulation) -> tight tolerance.
    def mm(a, w):
        return jnp.dot(a.astype(jnp.bfloat16), w.T.astype(jnp.bfloat16),
                       preferred_element_type=jnp.float32)
    ref_bf = jnp.maximum(mm(state, w1) + b1, 0.0)
    ref_bf = jnp.maximum(mm(ref_bf, w2) + b2, 0.0)
    ref_bf = max_action * jnp.tanh(mm(ref_bf, w3) + b3)
    assert jnp.allclose(out, ref_bf, atol=1e-3, rtol=1e-3)

    # Reference 2: full-f32 module semantics -> bf16-rounding tolerance.
    ref32 = jnp.maximum(state @ w1.T + b1, 0.0)
    ref32 = jnp.maximum(ref32 @ w2.T + b2, 0.0)
    ref32 = max_action * jnp.tanh(ref32 @ w3.T + b3)
    assert jnp.allclose(out, ref32, atol=5e-2, rtol=5e-2)

    print("KERNEL_OK")
</pallas_src>

<mosaic_0001>
module attributes {stable_mosaic.version = 11 : i64} {
  func.func @_actor_kernel(%arg0: i32, %arg1: memref<128x16xf32, #tpu.memory_space<vmem>>, %arg2: memref<32x16xf32, #tpu.memory_space<vmem>>, %arg3: memref<1x32xf32, #tpu.memory_space<vmem>>, %arg4: memref<32x32xf32, #tpu.memory_space<vmem>>, %arg5: memref<1x32xf32, #tpu.memory_space<vmem>>, %arg6: memref<8x32xf32, #tpu.memory_space<vmem>>, %arg7: memref<1x8xf32, #tpu.memory_space<vmem>>, %arg8: memref<128x8xf32, #tpu.memory_space<vmem>>) attributes {dimension_semantics = [#tpu.dimension_semantics<parallel>], iteration_bounds = array<i64: 1>, scalar_prefetch = 0 : i64, scratch_operands = 0 : i64, tpu.core_type = #tpu.core_type<tc>, window_params = [{transform_indices = @transform_0, window_bounds = array<i64: 128, 16>}, {pipeline_mode = #tpu.pipeline_mode<synchronous>, transform_indices = @transform_1, window_bounds = array<i64: 32, 16>}, {pipeline_mode = #tpu.pipeline_mode<synchronous>, transform_indices = @transform_2, window_bounds = array<i64: 1, 32>}, {pipeline_mode = #tpu.pipeline_mode<synchronous>, transform_indices = @transform_3, window_bounds = array<i64: 32, 32>}, {pipeline_mode = #tpu.pipeline_mode<synchronous>, transform_indices = @transform_4, window_bounds = array<i64: 1, 32>}, {pipeline_mode = #tpu.pipeline_mode<synchronous>, transform_indices = @transform_5, window_bounds = array<i64: 8, 32>}, {pipeline_mode = #tpu.pipeline_mode<synchronous>, transform_indices = @transform_6, window_bounds = array<i64: 1, 8>}, {transform_indices = @transform_7, window_bounds = array<i64: 128, 8>}]} {
    %c0 = arith.constant 0 : index
    %c0_0 = arith.constant 0 : index
    %0 = vector.load %arg1[%c0, %c0_0] : memref<128x16xf32, #tpu.memory_space<vmem>>, vector<128x16xf32>
    %1 = arith.truncf %0 : vector<128x16xf32> to vector<128x16xbf16>
    %c0_1 = arith.constant 0 : index
    %c0_2 = arith.constant 0 : index
    %2 = vector.load %arg2[%c0_1, %c0_2] : memref<32x16xf32, #tpu.memory_space<vmem>>, vector<32x16xf32>
    %3 = arith.truncf %2 : vector<32x16xf32> to vector<32x16xbf16>
    %cst = arith.constant dense<0.000000e+00> : vector<128x32xf32>
    %4 = tpu.matmul %1, %3, %cst {dimension_numbers = #tpu.dot_dimension_numbers<[1], [1], [0], [0], [0, 0, 1, 0], [], []>} : vector<128x16xbf16>, vector<32x16xbf16>, vector<128x32xf32> -> vector<128x32xf32>
    %c0_3 = arith.constant 0 : index
    %c0_4 = arith.constant 0 : index
    %5 = vector.load %arg3[%c0_3, %c0_4] : memref<1x32xf32, #tpu.memory_space<vmem>>, vector<1x32xf32>
    %6 = vector.broadcast %5 : vector<1x32xf32> to vector<128x32xf32>
    %7 = arith.addf %4, %6 : vector<128x32xf32>
    %cst_5 = arith.constant 0.000000e+00 : f32
    %8 = vector.broadcast %cst_5 : f32 to vector<128x32xf32>
    %9 = arith.maximumf %7, %8 : vector<128x32xf32>
    %10 = arith.truncf %9 : vector<128x32xf32> to vector<128x32xbf16>
    %c0_6 = arith.constant 0 : index
    %c0_7 = arith.constant 0 : index
    %11 = vector.load %arg4[%c0_6, %c0_7] : memref<32x32xf32, #tpu.memory_space<vmem>>, vector<32x32xf32>
    %12 = arith.truncf %11 : vector<32x32xf32> to vector<32x32xbf16>
    %cst_8 = arith.constant dense<0.000000e+00> : vector<128x32xf32>
    %13 = tpu.matmul %10, %12, %cst_8 {dimension_numbers = #tpu.dot_dimension_numbers<[1], [1], [0], [0], [0, 0, 1, 0], [], []>} : vector<128x32xbf16>, vector<32x32xbf16>, vector<128x32xf32> -> vector<128x32xf32>
    %c0_9 = arith.constant 0 : index
    %c0_10 = arith.constant 0 : index
    %14 = vector.load %arg5[%c0_9, %c0_10] : memref<1x32xf32, #tpu.memory_space<vmem>>, vector<1x32xf32>
    %15 = vector.broadcast %14 : vector<1x32xf32> to vector<128x32xf32>
    %16 = arith.addf %13, %15 : vector<128x32xf32>
    %cst_11 = arith.constant 0.000000e+00 : f32
    %17 = vector.broadcast %cst_11 : f32 to vector<128x32xf32>
    %18 = arith.maximumf %16, %17 : vector<128x32xf32>
    %19 = arith.truncf %18 : vector<128x32xf32> to vector<128x32xbf16>
    %c0_12 = arith.constant 0 : index
    %c0_13 = arith.constant 0 : index
    %20 = vector.load %arg6[%c0_12, %c0_13] : memref<8x32xf32, #tpu.memory_space<vmem>>, vector<8x32xf32>
    %21 = arith.truncf %20 : vector<8x32xf32> to vector<8x32xbf16>
    %cst_14 = arith.constant dense<0.000000e+00> : vector<128x8xf32>
    %22 = tpu.matmul %19, %21, %cst_14 {dimension_numbers = #tpu.dot_dimension_numbers<[1], [1], [0], [0], [0, 0, 1, 0], [], []>} : vector<128x32xbf16>, vector<8x32xbf16>, vector<128x8xf32> -> vector<128x8xf32>
    %c0_15 = arith.constant 0 : index
    %c0_16 = arith.constant 0 : index
    %23 = vector.load %arg7[%c0_15, %c0_16] : memref<1x8xf32, #tpu.memory_space<vmem>>, vector<1x8xf32>
    %24 = vector.broadcast %23 : vector<1x8xf32> to vector<128x8xf32>
    %25 = arith.addf %22, %24 : vector<128x8xf32>
    %26 = math.tanh %25 : vector<128x8xf32>
    %cst_17 = arith.constant 2.000000e+00 : f32
    %27 = vector.broadcast %cst_17 : f32 to vector<128x8xf32>
    %28 = arith.mulf %27, %26 : vector<128x8xf32>
    %c0_18 = arith.constant 0 : index
    %c0_19 = arith.constant 0 : index
    %29 = vector.load %arg8[%c0_18, %c0_19] : memref<128x8xf32, #tpu.memory_space<vmem>>, vector<128x8xf32>
    tpu.vector_store %arg8[%c0_18, %c0_19], %28 {strides = array<i32>} : memref<128x8xf32, #tpu.memory_space<vmem>>, vector<128x8xf32>,
    return
  }
  func.func @transform_0(%arg0: i32) -> (i32, i32) {
    %c0_i32 = arith.constant 0 : i32
    %c0_i32_0 = arith.constant 0 : i32
    return %arg0, %c0_i32 : i32, i32
  }
  func.func @transform_1(%arg0: i32) -> (i32, i32) {
    %c0_i32 = arith.constant 0 : i32
    %c0_i32_0 = arith.constant 0 : i32
    %c0_i32_1 = arith.constant 0 : i32
    return %c0_i32, %c0_i32_0 : i32, i32
  }
  func.func @transform_2(%arg0: i32) -> (i32, i32) {
    %c0_i32 = arith.constant 0 : i32
    %c0_i32_0 = arith.constant 0 : i32
    %c0_i32_1 = arith.constant 0 : i32
    return %c0_i32, %c0_i32_0 : i32, i32
  }
  func.func @transform_3(%arg0: i32) -> (i32, i32) {
    %c0_i32 = arith.constant 0 : i32
    %c0_i32_0 = arith.constant 0 : i32
    %c0_i32_1 = arith.constant 0 : i32
    return %c0_i32, %c0_i32_0 : i32, i32
  }
  func.func @transform_4(%arg0: i32) -> (i32, i32) {
    %c0_i32 = arith.constant 0 : i32
    %c0_i32_0 = arith.constant 0 : i32
    %c0_i32_1 = arith.constant 0 : i32
    return %c0_i32, %c0_i32_0 : i32, i32
  }
  func.func @transform_5(%arg0: i32) -> (i32, i32) {
    %c0_i32 = arith.constant 0 : i32
    %c0_i32_0 = arith.constant 0 : i32
    %c0_i32_1 = arith.constant 0 : i32
    return %c0_i32, %c0_i32_0 : i32, i32
  }
  func.func @transform_6(%arg0: i32) -> (i32, i32) {
    %c0_i32 = arith.constant 0 : i32
    %c0_i32_0 = arith.constant 0 : i32
    %c0_i32_1 = arith.constant 0 : i32
    return %c0_i32, %c0_i32_0 : i32, i32
  }
  func.func @transform_7(%arg0: i32) -> (i32, i32) {
    %c0_i32 = arith.constant 0 : i32
    %c0_i32_0 = arith.constant 0 : i32
    return %arg0, %c0_i32 : i32, i32
  }
}

</mosaic_0001>

<bundles_post_ra>
// kernel: tpu_custom_call.1
= control target key start
LH: loop header
LB: loop body
LE: loop exit
PB: predicated region body
PF: predicated region fallthrough
CT: control target
= control target key end

     0   :  { %12 = vsyncpa [#allocation3], 0  ;;  %vm65_vm0 = vcmask 130048   ;;  %vm230_vm1 = vcmask 261120   ;;  %vm547_vm2 = vcmask 64512   ;;  %s973_s0 = inlined_call_operand.vmem [shape: f32[8,16], index: 0, kind: input, shape index: {}]   ;;  %s974_s1 = inlined_call_operand.vmem [shape: f32[32,16], index: 1, kind: input, shape index: {}]   ;;  %s975_s2 = inlined_call_operand.vmem [shape: f32[1,32], index: 2, kind: input, shape index: {}]   ;;  %s976_s3 = inlined_call_operand.vmem [shape: f32[32,32], index: 3, kind: input, shape index: {}]   ;;  %s977_s4 = inlined_call_operand.vmem [shape: f32[1,32], index: 4, kind: input, shape index: {}]   ;;  %s978_s5 = inlined_call_operand.vmem [shape: f32[8,32], index: 5, kind: input, shape index: {}]   ;;  %s979_s6 = inlined_call_operand.vmem [shape: f32[1,8], index: 6, kind: input, shape index: {}]   ;;  %s980_s7 = inlined_call_operand.hbm [shape: f32[8,8], index: 7, kind: output, shape index: {}]  }
   0x1   :  { %v52_v0 = vld [vmem:[%s974_s1] sm:$0xff]  ;;  %v53_v1 = vld [vmem:[%s974_s1 + $0x8] sm:$0xff]  ;;  %v54_v3 = vld [vmem:[%s974_s1 + $0x10] sm:$0xff] }
   0x2   :  { %v56_v2 = vpack.c.bf16 %v53_v1, %v52_v0  ;;  %v55_v4 = vld [vmem:[%s974_s1 + $0x18] sm:$0xff]  ;;  %v28_v5 = vld [vmem:[%s973_s0] sm:$0xff]  ;;  %v29_v7 = vld [vmem:[%s973_s0 + $0x8] sm:$0xff] }
   0x3   :  { %v57_v6 = vpack.c.bf16 %v55_v4, %v54_v3  ;;  %v44_v9 = vpack.c.bf16 %v29_v7, %v28_v5  ;;  %v36_v10 = vld [vmem:[%s973_s0 + $0x40] sm:$0xff]  ;;  %v37_v11 = vld [vmem:[%s973_s0 + $0x48] sm:$0xff]  ;;  %v30_v17 = vld [vmem:[%s973_s0 + $0x10] sm:$0xff] }
   0x4   :  { %698 = vmatprep.subr.msk.bf16.mxu0 %vm65_vm0, %v56_v2  ;;  %v91_v8 = vsel %vm65_vm0, %v56_v2, 0  ;;  %699 = vmatprep.subr.msk.bf16.mxu1 %vm65_vm0, %v56_v2  ;;  %v48_v12 = vpack.c.bf16 %v37_v11, %v36_v10  ;;  %v217_v13 = vld [vmem:[%s976_s3] sm:$0xff]  ;;  %v218_v14 = vld [vmem:[%s976_s3 + $0x8] sm:$0xff]  ;;  %v31_v18 = vld [vmem:[%s973_s0 + $0x18] sm:$0xff] }
   0x5   :  { %637 = vmatpush3.bf16.xpose.msra.mxu0 %v91_v8  ;;  %696 = vmatpush3.bf16.xpose.msra.mxu1 %v91_v8  ;;  %v94_v15 = vsel %vm65_vm0, %v57_v6, 0  ;;  %v221_v16 = vpack.c.bf16 %v218_v14, %v217_v13  ;;  %v32_v19 = vld [vmem:[%s973_s0 + $0x20] sm:$0xff]  ;;  %v38_v20 = vld [vmem:[%s973_s0 + $0x50] sm:$0xff]  ;;  %v39_v21 = vld [vmem:[%s973_s0 + $0x58] sm:$0xff]  ;;  %v45_v25 = vpack.c.bf16 %v31_v18, %v30_v17 }
   0x6   :  { %700 = vmatprep.subr.msk.bf16.mxu0 %vm65_vm0, %v57_v6  ;;  %640 = vmatprep.mubr.msk.bf16.mxu0 %vm65_vm0, %v44_v9  ;;  %v33_v22 = vld [vmem:[%s973_s0 + $0x28] sm:$0xff]  ;;  %v40_v23 = vld [vmem:[%s973_s0 + $0x60] sm:$0xff]  ;;  %v49_v26 = vpack.c.bf16 %v39_v21, %v38_v20  ;;  %v34_v30 = vld [vmem:[%s973_s0 + $0x30] sm:$0xff] }
   0x7   :  { %701 = vmatprep.subr.msk.bf16.mxu1 %vm65_vm0, %v57_v6  ;;  %648 = vmatprep.mubr.msk.bf16.mxu1 %vm65_vm0, %v48_v12  ;;  %v41_v24 = vld [vmem:[%s973_s0 + $0x68] sm:$0xff]  ;;  %v46_v27 = vpack.c.bf16 %v33_v22, %v32_v19  ;;  %v256_v29 = vsel %vm230_vm1, %v221_v16, 0  ;;  %v35_v31 = vld [vmem:[%s973_s0 + $0x38] sm:$0xff]  ;;  %v42_v32 = vld [vmem:[%s973_s0 + $0x70] sm:$0xff] }
   0x8   :  { %v50_v28 = vpack.c.bf16 %v41_v24, %v40_v23  ;;  %v43_v33 = vld [vmem:[%s973_s0 + $0x78] sm:$0xff]  ;;  %v47_v34 = vpack.c.bf16 %v35_v31, %v34_v30  ;;  %v219_v36 = vld [vmem:[%s976_s3 + $0x10] sm:$0xff]  ;;  %v382_v40 = vld [vmem:[%s978_s5] sm:$0xff] }
   0x9   :  { %v51_v35 = vpack.c.bf16 %v43_v33, %v42_v32  ;;  %v220_v37 = vld [vmem:[%s976_s3 + $0x18] sm:$0xff]  ;;  %v383_v41 = vpack.c.bf16 %v382_v40, %v382_v40  ;;  %v580_v43 = vld [vmem:[%s975_s2] ss:$0 sm:$0xff] }
   0xa   :  { %v222_v38 = vpack.c.bf16 %v220_v37, %v219_v36  ;;  %v589_v36 = vld [vmem:[%s977_s4] ss:$0 sm:$0xff] }
   0xb   :  { %v416_v42 = vsel %vm230_vm1, %v383_v41, 0 }
   0xc   :  { %v259_v39 = vsel %vm230_vm1, %v222_v38, 0 }
   0xd   :  { %639 = vmatpush3.bf16.xpose.msra.mxu0 %v94_v15  ;;  %697 = vmatpush3.bf16.xpose.msra.mxu1 %v94_v15 }
   0xe   :  { %702 = vmatprep.subr.msk.bf16.mxu1 %vm230_vm1, %v221_v16  ;;  %704 = vmatprep.subr.msk.bf16.mxu0 %vm230_vm1, %v383_v41 }
  0x14   :  { %641 = vmatmul.mubr.msk.bf16.vlgmr.msra.gmra.mrb[0].mxu0 %vm65_vm0, %v45_v25  ;;  %649 = vmatmul.mubr.msk.bf16.vlgmr.msra.gmra.mrb[0].mxu1 %vm65_vm0, %v49_v26 }
  0x15   :  { %644 = vmatprep.mubr.msk.bf16.mxu0 %vm65_vm0, %v46_v27  ;;  %652 = vmatprep.mubr.msk.bf16.mxu1 %vm65_vm0, %v50_v28 }
  0x16   :  { %657 = vmatpush3.bf16.xpose.msra.mxu1 %v256_v29  ;;  %677 = vmatpush3.bf16.xpose.msra.mxu0 %v416_v42 }
  0x17   :  { %703 = vmatprep.subr.msk.bf16.mxu1 %vm230_vm1, %v222_v38 }
  0x1c   :  { %645 = vmatmul.mubr.msk.bf16.gmra.mrb[4].mxu0 %vm65_vm0, %v47_v34  ;;  %653 = vmatmul.mubr.msk.bf16.gmra.mrb[4].mxu1 %vm65_vm0, %v51_v35 }
  0x1e   :  { %659 = vmatpush3.bf16.xpose.msra.mxu1 %v259_v39 }
  0xe7   :  { %v642_v44 = vpop.f32.mrb[0].mxu0  ;;  %v650_v45 = vpop.f32.mrb[0].mxu1 }
  0xe8   :  { %v139_v46 = vadd.f32 %v642_v44, %v580_v43  ;;  %v130_v47 = vpop.f32.mrb[1].mxu0  ;;  %v171_v48 = vadd.f32 %v650_v45, %v580_v43  ;;  %v162_v49 = vpop.f32.mrb[1].mxu1 }
  0xe9   :  { %v131_v50 = vadd.f32 %v580_v43, %v130_v47  ;;  %v643_v51 = vpop.f32.mrb[2].mxu0  ;;  %v163_v52 = vadd.f32 %v580_v43, %v162_v49  ;;  %v651_v53 = vpop.f32.mrb[2].mxu1 }
  0xea   :  { %v142_v54 = vadd.f32 %v643_v51, %v580_v43  ;;  %v133_v55 = vpop.f32.mrb[3].mxu0  ;;  %v203_v56 = vmax.f32 %v171_v48, 0.0  ;;  %v174_v57 = vadd.f32 %v651_v53, %v580_v43  ;;  %v165_v58 = vpop.f32.mrb[3].mxu1  ;;  %v195_v62 = vmax.f32 %v139_v46, 0.0 }
  0xeb   :  { %v134_v59 = vadd.f32 %v580_v43, %v133_v55  ;;  %v201_v60 = vmax.f32 %v163_v52, 0.0  ;;  %v166_v61 = vadd.f32 %v580_v43, %v165_v58  ;;  %v193_v1 = vmax.f32 %v131_v50, 0.0 }
  0xec   :  { %v196_v63 = vmax.f32 %v142_v54, 0.0  ;;  %v204_v0 = vmax.f32 %v174_v57, 0.0 }
  0xed   :  { %v194_v2 = vmax.f32 %v134_v59, 0.0  ;;  %v202_v3 = vmax.f32 %v166_v61, 0.0 }
  0xee   :  { %v210_v4 = vpack.c.bf16 %v196_v63, %v195_v62  ;;  %v214_v5 = vpack.c.bf16 %v204_v0, %v203_v56 }
  0xef   :  { %v209_v6 = vpack.c.bf16 %v194_v2, %v193_v1  ;;  %v646_v7 = vpop.f32.mrb[4].mxu0  ;;  %v213_v8 = vpack.c.bf16 %v202_v3, %v201_v60  ;;  %v654_v9 = vpop.f32.mrb[4].mxu1 }
  0xf0   :  { %v155_v10 = vadd.f32 %v646_v7, %v580_v43  ;;  %v146_v11 = vpop.f32.mrb[5].mxu0  ;;  %v187_v12 = vadd.f32 %v654_v9, %v580_v43  ;;  %v178_v13 = vpop.f32.mrb[5].mxu1 }
  0xf1   :  { %v147_v14 = vadd.f32 %v580_v43, %v146_v11  ;;  %v647_v15 = vpop.f32.mrb[6].mxu0  ;;  %660 = vmatprep.mubr.msk.bf16.mxu1 %vm230_vm1, %v209_v6  ;;  %v179_v16 = vadd.f32 %v580_v43, %v178_v13  ;;  %v655_v17 = vpop.f32.mrb[6].mxu1 }
  0xf2   :  { %v158_v18 = vadd.f32 %v647_v15, %v580_v43  ;;  %v149_v19 = vpop.f32.mrb[7].mxu0  ;;  %661 = vmatmul.mubr.msk.bf16.vlgmr.msra.gmra.mrb[8].mxu1 %vm230_vm1, %v210_v4  ;;  %v207_v20 = vmax.f32 %v187_v12, 0.0  ;;  %v190_v21 = vadd.f32 %v655_v17, %v580_v43  ;;  %v181_v22 = vpop.f32.mrb[7].mxu1  ;;  %v199_v26 = vmax.f32 %v155_v10, 0.0 }
  0xf3   :  { %v150_v23 = vadd.f32 %v580_v43, %v149_v19  ;;  %v205_v24 = vmax.f32 %v179_v16, 0.0  ;;  %v182_v25 = vadd.f32 %v580_v43, %v181_v22  ;;  %v197_v29 = vmax.f32 %v147_v14, 0.0 }
  0xf4   :  { %v200_v27 = vmax.f32 %v158_v18, 0.0  ;;  %v208_v28 = vmax.f32 %v190_v21, 0.0 }
  0xf5   :  { %v198_v30 = vmax.f32 %v150_v23, 0.0  ;;  %v206_v31 = vmax.f32 %v182_v25, 0.0 }
  0xf6   :  { %v212_v32 = vpack.c.bf16 %v200_v27, %v199_v26  ;;  %v216_v33 = vpack.c.bf16 %v208_v28, %v207_v20 }
  0xf7   :  { %v211_v34 = vpack.c.bf16 %v198_v30, %v197_v29  ;;  %v215_v35 = vpack.c.bf16 %v206_v31, %v205_v24  ;;  %v927_v29 = vld [vmem:[%s979_s6] ss:$0 sm:$0xff] }
  0xf9   :  { %664 = vmatprep.mubr.msk.bf16.mxu1 %vm230_vm1, %v211_v34 }
  0xfa   :  { %665 = vmatmul.mubr.msk.bf16.gmra.mrb[12].mxu1 %vm230_vm1, %v212_v32 }
  0xfb   :  { %668 = vmatprep.mubr.msk.bf16.mxu1 %vm230_vm1, %v213_v8 }
 0x102   :  { %669 = vmatmul.mubr.msk.bf16.gmra.mrb[16].mxu1 %vm230_vm1, %v214_v5 }
 0x103   :  { %672 = vmatprep.mubr.msk.bf16.mxu1 %vm230_vm1, %v215_v35 }
 0x10a   :  { %673 = vmatmul.mubr.msk.bf16.gmra.mrb[20].mxu1 %vm230_vm1, %v216_v33 }
 0x1c5   :  { %v662_v37 = vpop.f32.mrb[8].mxu1 }
 0x1c6   :  { %v304_v38 = vadd.f32 %v662_v37, %v589_v36  ;;  %v295_v39 = vpop.f32.mrb[9].mxu1 }
 0x1c7   :  { %v296_v40 = vadd.f32 %v589_v36, %v295_v39  ;;  %v663_v41 = vpop.f32.mrb[10].mxu1 }
 0x1c8   :  { %v307_v42 = vadd.f32 %v663_v41, %v589_v36  ;;  %v298_v43 = vpop.f32.mrb[11].mxu1  ;;  %v360_v45 = vmax.f32 %v304_v38, 0.0 }
 0x1c9   :  { %v299_v44 = vadd.f32 %v589_v36, %v298_v43  ;;  %v358_v47 = vmax.f32 %v296_v40, 0.0 }
 0x1ca   :  { %v361_v46 = vmax.f32 %v307_v42, 0.0 }
 0x1cb   :  { %v359_v48 = vmax.f32 %v299_v44, 0.0 }
 0x1cc   :  { %v375_v49 = vpack.c.bf16 %v361_v46, %v360_v45 }
 0x1cd   :  { %v374_v50 = vpack.c.bf16 %v359_v48, %v358_v47  ;;  %v666_v51 = vpop.f32.mrb[12].mxu1 }
 0x1ce   :  { %v320_v52 = vadd.f32 %v666_v51, %v589_v36  ;;  %v311_v53 = vpop.f32.mrb[13].mxu1 }
 0x1cf   :  { %v312_v54 = vadd.f32 %v589_v36, %v311_v53  ;;  %v667_v55 = vpop.f32.mrb[14].mxu1  ;;  %678 = vmatprep.mubr.msk.bf16.mxu0 %vm230_vm1, %v374_v50 }
 0x1d0   :  { %v323_v56 = vadd.f32 %v667_v55, %v589_v36  ;;  %v314_v57 = vpop.f32.mrb[15].mxu1  ;;  %679 = vmatmul.mubr.msk.bf16.vlgmr.msra.gmra.mrb[8].mxu0 %vm230_vm1, %v375_v49  ;;  %v364_v59 = vmax.f32 %v320_v52, 0.0 }
 0x1d1   :  { %v315_v58 = vadd.f32 %v589_v36, %v314_v57  ;;  %v362_v61 = vmax.f32 %v312_v54, 0.0 }
 0x1d2   :  { %v365_v60 = vmax.f32 %v323_v56, 0.0 }
 0x1d3   :  { %v363_v62 = vmax.f32 %v315_v58, 0.0 }
 0x1d4   :  { %v377_v63 = vpack.c.bf16 %v365_v60, %v364_v59 }
 0x1d5   :  { %v376_v0 = vpack.c.bf16 %v363_v62, %v362_v61  ;;  %v670_v1 = vpop.f32.mrb[16].mxu1 }
 0x1d6   :  { %v336_v2 = vadd.f32 %v670_v1, %v589_v36  ;;  %v327_v3 = vpop.f32.mrb[17].mxu1 }
 0x1d7   :  { %v328_v4 = vadd.f32 %v589_v36, %v327_v3  ;;  %v671_v5 = vpop.f32.mrb[18].mxu1  ;;  %682 = vmatprep.mubr.msk.bf16.mxu0 %vm230_vm1, %v376_v0 }
 0x1d8   :  { %v339_v6 = vadd.f32 %v671_v5, %v589_v36  ;;  %v330_v7 = vpop.f32.mrb[19].mxu1  ;;  %683 = vmatmul.mubr.msk.bf16.gmra.mrb[12].mxu0 %vm230_vm1, %v377_v63  ;;  %v368_v9 = vmax.f32 %v336_v2, 0.0 }
 0x1d9   :  { %v331_v8 = vadd.f32 %v589_v36, %v330_v7  ;;  %v366_v11 = vmax.f32 %v328_v4, 0.0 }
 0x1da   :  { %v369_v10 = vmax.f32 %v339_v6, 0.0 }
 0x1db   :  { %v367_v12 = vmax.f32 %v331_v8, 0.0 }
 0x1dc   :  { %v379_v13 = vpack.c.bf16 %v369_v10, %v368_v9 }
 0x1dd   :  { %v378_v14 = vpack.c.bf16 %v367_v12, %v366_v11  ;;  %v674_v15 = vpop.f32.mrb[20].mxu1 }
 0x1de   :  { %v352_v16 = vadd.f32 %v674_v15, %v589_v36  ;;  %v343_v17 = vpop.f32.mrb[21].mxu1 }
 0x1df   :  { %v344_v18 = vadd.f32 %v589_v36, %v343_v17  ;;  %v675_v19 = vpop.f32.mrb[22].mxu1  ;;  %686 = vmatprep.mubr.msk.bf16.mxu0 %vm230_vm1, %v378_v14 }
 0x1e0   :  { %v355_v20 = vadd.f32 %v675_v19, %v589_v36  ;;  %v346_v21 = vpop.f32.mrb[23].mxu1  ;;  %687 = vmatmul.mubr.msk.bf16.gmra.mrb[16].mxu0 %vm230_vm1, %v379_v13  ;;  %v372_v23 = vmax.f32 %v352_v16, 0.0 }
 0x1e1   :  { %v347_v22 = vadd.f32 %v589_v36, %v346_v21  ;;  %v370_v25 = vmax.f32 %v344_v18, 0.0 }
 0x1e2   :  { %v373_v24 = vmax.f32 %v355_v20, 0.0 }
 0x1e3   :  { %v371_v26 = vmax.f32 %v347_v22, 0.0 }
 0x1e4   :  { %v381_v27 = vpack.c.bf16 %v373_v24, %v372_v23 }
 0x1e5   :  { %v380_v28 = vpack.c.bf16 %v371_v26, %v370_v25 }
 0x1e7   :  { %690 = vmatprep.mubr.msk.bf16.mxu0 %vm230_vm1, %v380_v28 }
 0x1e8   :  { %691 = vmatmul.mubr.msk.bf16.gmra.mrb[20].mxu0 %vm230_vm1, %v381_v27 }
 0x2a3   :  { %v680_v30 = vpop.f32.mrb[8].mxu0 }
 0x2a4   :  { %v461_v31 = vadd.f32 %v680_v30, %v927_v29  ;;  %v452_v32 = vpop.f32.mrb[9].mxu0 }
 0x2a5   :  { %v453_v33 = vadd.f32 %v927_v29, %v452_v32  ;;  %v681_v34 = vpop.f32.mrb[10].mxu0 }
 0x2a6   :  { %708 = vtanh.f32 %v461_v31  ;;  %v464_v35 = vadd.f32 %v681_v34, %v927_v29  ;;  %v455_v36 = vpop.f32.mrb[11].mxu0 }
 0x2a7   :  { %710 = vtanh.f32 %v453_v33  ;;  %v456_v37 = vadd.f32 %v927_v29, %v455_v36 }
 0x2a8   :  { %712 = vtanh.f32 %v464_v35 }
 0x2a9   :  { %714 = vtanh.f32 %v456_v37 }
 0x2ab   :  { %v684_v38 = vpop.f32.mrb[12].mxu0 }
 0x2ac   :  { %v477_v39 = vadd.f32 %v684_v38, %v927_v29  ;;  %v468_v40 = vpop.f32.mrb[13].mxu0 }
 0x2ad   :  { %v469_v41 = vadd.f32 %v927_v29, %v468_v40  ;;  %v685_v42 = vpop.f32.mrb[14].mxu0 }
 0x2ae   :  { %716 = vtanh.f32 %v477_v39  ;;  %v480_v43 = vadd.f32 %v685_v42, %v927_v29  ;;  %v471_v44 = vpop.f32.mrb[15].mxu0 }
 0x2af   :  { %718 = vtanh.f32 %v469_v41  ;;  %v472_v45 = vadd.f32 %v927_v29, %v471_v44 }
 0x2b0   :  { %v709_v46 = vpop.eup %708  ;;  %720 = vtanh.f32 %v480_v43 }
 0x2b1   :  { %v711_v47 = vpop.eup %710  ;;  %v533_v48 = vmul.f32 2.0, %v709_v46  ;;  %722 = vtanh.f32 %v472_v45 }
 0x2b2   :  { %v713_v49 = vpop.eup %712  ;;  %v531_v50 = vmul.f32 2.0, %v711_v47 }
 0x2b3   :  { %v715_v51 = vpop.eup %714  ;;  %550 = vst.msk [vmem:[#allocation2 + $0x10] sm:$0xff] %vm547_vm2, %v533_v48  ;;  %v534_v52 = vmul.f32 2.0, %v713_v49  ;;  %v688_v53 = vpop.f32.mrb[16].mxu0 }
 0x2b4   :  { %548 = vst.msk [vmem:[#allocation2] sm:$0xff] %vm547_vm2, %v531_v50  ;;  %v532_v54 = vmul.f32 2.0, %v715_v51  ;;  %v493_v55 = vadd.f32 %v688_v53, %v927_v29  ;;  %v484_v56 = vpop.f32.mrb[17].mxu0 }
 0x2b5   :  { %551 = vst.msk [vmem:[#allocation2 + $0x18] sm:$0xff] %vm547_vm2, %v534_v52  ;;  %v485_v57 = vadd.f32 %v927_v29, %v484_v56  ;;  %v689_v58 = vpop.f32.mrb[18].mxu0 }
 0x2b6   :  { %549 = vst.msk [vmem:[#allocation2 + $0x8] sm:$0xff] %vm547_vm2, %v532_v54  ;;  %724 = vtanh.f32 %v493_v55  ;;  %v496_v59 = vadd.f32 %v689_v58, %v927_v29  ;;  %v487_v60 = vpop.f32.mrb[19].mxu0 }
 0x2b7   :  { %726 = vtanh.f32 %v485_v57  ;;  %v488_v61 = vadd.f32 %v927_v29, %v487_v60 }
 0x2b8   :  { %v717_v62 = vpop.eup %716  ;;  %728 = vtanh.f32 %v496_v59 }
 0x2b9   :  { %v719_v63 = vpop.eup %718  ;;  %v537_v0 = vmul.f32 2.0, %v717_v62  ;;  %730 = vtanh.f32 %v488_v61 }
 0x2ba   :  { %v721_v1 = vpop.eup %720  ;;  %v535_v2 = vmul.f32 2.0, %v719_v63 }
 0x2bb   :  { %v723_v3 = vpop.eup %722  ;;  %554 = vst.msk [vmem:[#allocation2 + $0x30] sm:$0xff] %vm547_vm2, %v537_v0  ;;  %v538_v4 = vmul.f32 2.0, %v721_v1  ;;  %v692_v5 = vpop.f32.mrb[20].mxu0 }
 0x2bc   :  { %552 = vst.msk [vmem:[#allocation2 + $0x20] sm:$0xff] %vm547_vm2, %v535_v2  ;;  %v536_v6 = vmul.f32 2.0, %v723_v3  ;;  %v509_v7 = vadd.f32 %v692_v5, %v927_v29  ;;  %v500_v8 = vpop.f32.mrb[21].mxu0 }
 0x2bd   :  { %555 = vst.msk [vmem:[#allocation2 + $0x38] sm:$0xff] %vm547_vm2, %v538_v4  ;;  %v501_v9 = vadd.f32 %v927_v29, %v500_v8  ;;  %v693_v10 = vpop.f32.mrb[22].mxu0 }
 0x2be   :  { %553 = vst.msk [vmem:[#allocation2 + $0x28] sm:$0xff] %vm547_vm2, %v536_v6  ;;  %732 = vtanh.f32 %v509_v7  ;;  %v512_v11 = vadd.f32 %v693_v10, %v927_v29  ;;  %v503_v12 = vpop.f32.mrb[23].mxu0 }
 0x2bf   :  { %734 = vtanh.f32 %v501_v9  ;;  %v504_v13 = vadd.f32 %v927_v29, %v503_v12 }
 0x2c0   :  { %v725_v14 = vpop.eup %724  ;;  %736 = vtanh.f32 %v512_v11 }
 0x2c1   :  { %v727_v15 = vpop.eup %726  ;;  %v541_v16 = vmul.f32 2.0, %v725_v14  ;;  %738 = vtanh.f32 %v504_v13 }
 0x2c2   :  { %v729_v17 = vpop.eup %728  ;;  %v539_v18 = vmul.f32 2.0, %v727_v15 }
 0x2c3   :  { %v731_v19 = vpop.eup %730  ;;  %558 = vst.msk [vmem:[#allocation2 + $0x50] sm:$0xff] %vm547_vm2, %v541_v16  ;;  %v542_v20 = vmul.f32 2.0, %v729_v17 }
 0x2c4   :  { %556 = vst.msk [vmem:[#allocation2 + $0x40] sm:$0xff] %vm547_vm2, %v539_v18  ;;  %v540_v21 = vmul.f32 2.0, %v731_v19 }
 0x2c5   :  { %559 = vst.msk [vmem:[#allocation2 + $0x58] sm:$0xff] %vm547_vm2, %v542_v20 }
 0x2c6   :  { %557 = vst.msk [vmem:[#allocation2 + $0x48] sm:$0xff] %vm547_vm2, %v540_v21 }
 0x2c8   :  { %v733_v22 = vpop.eup %732 }
 0x2c9   :  { %v735_v23 = vpop.eup %734  ;;  %v545_v24 = vmul.f32 2.0, %v733_v22 }
 0x2ca   :  { %v737_v25 = vpop.eup %736  ;;  %v543_v26 = vmul.f32 2.0, %v735_v23 }
 0x2cb   :  { %v739_v27 = vpop.eup %738  ;;  %562 = vst.msk [vmem:[#allocation2 + $0x70] sm:$0xff] %vm547_vm2, %v545_v24  ;;  %v546_v28 = vmul.f32 2.0, %v737_v25 }
 0x2cc   :  { %560 = vst.msk [vmem:[#allocation2 + $0x60] sm:$0xff] %vm547_vm2, %v543_v26  ;;  %v544_v29 = vmul.f32 2.0, %v739_v27 }
 0x2cd   :  { %563 = vst.msk [vmem:[#allocation2 + $0x78] sm:$0xff] %vm547_vm2, %v546_v28 }
 0x2ce   :  { %561 = vst.msk [vmem:[#allocation2 + $0x68] sm:$0xff] %vm547_vm2, %v544_v29 }
 0x2cf   :  { %568 = vsyncadd [#allocation3], 1920  ;;  %s764_s6 = smov [#allocation2]  }
 0x2d0   :  { %s569_s27 = sshll.u32 %s764_s6, 4  ;;  %s570_s27 = int_to_ptr.vmem [resolvable:$true] %s569_s27 }
 0x2d1   :  { %s740_s28 = scalar_lea.vmem %s570_s27, 128  ;;  %s744_s29 = scalar_lea.vmem %s570_s27, 2048 }
 0x2d2   :  { %p741_p0 = scmp.ne.s32.totalorder %s570_s27, %s740_s28  ;;  %p745_p1 = scmp.lt.s32.totalorder %s570_s27, %s570_s27 }
 0x2d3   :  { %p746_p2 = scmp.lt.s32.totalorder %s744_s29, %s740_s28 }
 0x2d5   :  { %p747_p3 = por %p746_p2, %p745_p1 }
 0x2d7   :  { %p748_p4 = pnand %p747_p3, %p741_p0 }
 0x2d9   :  { %751 = shalt.err (!%p748_p4)
}
 0x2da   :  { %s752_s9 = scalar_lea.hbm %s980_s7, 128 }
 0x2db   :  { %p753_p5 = scmp.ne.s32.totalorder %s980_s7, %s752_s9  ;;  %p756_p6 = scmp.lt.u32.totalorder %s752_s9, %s980_s7 }
 0x2dd   :  { %p758_p7 = pnand %p756_p6, %p753_p5 }
 0x2df   :  { %761 = shalt.err (!%p758_p7)
}
 0x2e0   :  { %s765_s1 = smov 128   ;;  %s766_s14 = smov 8  }
 0x2e1   :  { %575 = dma.vmem_to_hbm [thread:$0]  %s570_s27, 128, %s980_s7, [#allocation3], %s765_s1, %s765_s1, %s766_s14  }
 0x2e2   :  { %762 = dma.done.wait [#allocation3], 2048  }
 0x2e3   :  { %763 = vsyncadd [#allocation3], 4294965248 }
 0x2e4   :  { %579 = vsyncpa [#allocation3], 1 }

</bundles_post_ra>
